<compile_context>
chip_gen: v7x
topology: tpu7x:2x2x1
jax: 0.10.0
libtpu: 0.0.40
codegen_flags: <defaults>
</compile_context>

<pallas_src>
import jax
import jax.numpy as jnp
from jax.experimental import pallas as pl
from jax.experimental.pallas import tpu as pltpu


def make_channel_gate_kernel(real_hw: int, hw_pad: int):
    """Builds the kernel with the real / padded spatial sizes baked in."""
    inv_hw = 1.0 / float(real_hw)
    needs_mask = hw_pad != real_hw

    def channel_gate_kernel(x_ref, w1_ref, w2_ref, out_ref):
        # x_ref:  (Bb, C, HW_pad) in VMEM (Bb batch elements per grid step)
        # w1_ref: (C, Cr)   transposed 1x1-conv weight of mlp[0]
        # w2_ref: (Cr, C)   transposed 1x1-conv weight of mlp[2]
        # out_ref:(Bb, C, HW_pad)
        x = x_ref[...].astype(jnp.float32)                       # (Bb, C, HWp)

        if needs_mask:
            lane = jax.lax.broadcasted_iota(jnp.int32, x.shape, 2)
            valid = lane < real_hw
            sum_x = jnp.sum(jnp.where(valid, x, 0.0), axis=-1)   # (Bb, C)
            max_x = jnp.max(jnp.where(valid, x, -jnp.inf), axis=-1)
        else:
            sum_x = jnp.sum(x, axis=-1)                          # (Bb, C)
            max_x = jnp.max(x, axis=-1)                          # (Bb, C)

        avg_pool = sum_x * inv_hw                                # (Bb, C)

        # Fused MLP: one matmul pair for all pooled vectors of this block.
        pooled = jnp.concatenate([avg_pool, max_x], axis=0)      # (2*Bb, C)
        h = jnp.dot(pooled, w1_ref[...],
                    preferred_element_type=jnp.float32)          # (2*Bb, Cr)
        h = jnp.maximum(h, 0.0)                                  # ReLU
        att = jnp.dot(h, w2_ref[...],
                      preferred_element_type=jnp.float32)        # (2*Bb, C)

        bb = avg_pool.shape[0]
        scale = jax.nn.sigmoid(att[:bb, :] + att[bb:, :])        # (Bb, C)

        # Broadcast multiply; re-read x from VMEM (streams through vld slots
        # instead of pinning the whole tile in vregs across the MLP).
        out_ref[...] = (x_ref[...].astype(jnp.float32)
                        * scale[:, :, None]).astype(out_ref.dtype)

    return channel_gate_kernel


def _choose_batch_block(B: int, block_elem_bytes: int) -> int:
    """Pick Bb: largest divisor of B with 4 buffered blocks under ~48 MiB and
    grid length >= 2 (keeps both v7x TensorCores fed)."""
    budget = 48 * 1024 * 1024
    max_bb_vmem = max(1, budget // max(1, 4 * block_elem_bytes))
    bb = min(8, max_bb_vmem)
    if B >= 2:
        bb = min(bb, B // 2)          # grid length >= 2
    bb = max(1, bb)
    while B % bb != 0:                # must tile the batch exactly
        bb -= 1
    return bb


def channel_gate(x_nchw, w1, w2):
    """x_nchw: (B, C, H, W); w1: (C, Cr); w2: (Cr, C). Returns (B, C, H, W)."""
    B, C, H, W = x_nchw.shape
    HW = H * W
    Cr = w1.shape[1]

    # Lane-dense last dim: pad HW up to a multiple of 128.
    HW_pad = ((HW + 127) // 128) * 128
    x_flat = x_nchw.reshape(B, C, HW)
    if HW_pad != HW:
        x_flat = jnp.pad(x_flat, ((0, 0), (0, 0), (0, HW_pad - HW)))

    itemsize = x_flat.dtype.itemsize
    per_batch_block_bytes = C * HW_pad * itemsize
    Bb = _choose_batch_block(B, per_batch_block_bytes)

    # VMEM budget: double-buffered input + output blocks, resident weights,
    # ~1 MiB compiler scratch.  Clamp to [32 MiB, physical VMEM * 3/4].
    block_bytes = Bb * per_batch_block_bytes
    weight_bytes = 2 * (w1.size * w1.dtype.itemsize + w2.size * w2.dtype.itemsize)
    vmem_bytes = 4 * block_bytes + weight_bytes + (1 << 20)
    try:
        phys_vmem = int(pltpu.get_tpu_info().vmem_capacity_bytes)
    except Exception:
        phys_vmem = 64 * 1024 * 1024  # conservative: v7x per-TC VMEM
    vmem_limit = min(max(vmem_bytes, 32 * 1024 * 1024), (phys_vmem * 3) // 4)

    kernel = make_channel_gate_kernel(HW, HW_pad)

    out_flat = pl.pallas_call(
        kernel,
        out_shape=jax.ShapeDtypeStruct((B, C, HW_pad), x_nchw.dtype),
        grid_spec=pltpu.PrefetchScalarGridSpec(
            num_scalar_prefetch=0,
            grid=(B // Bb,),
            in_specs=[
                pl.BlockSpec((Bb, C, HW_pad), lambda b: (b, 0, 0)),
                pl.BlockSpec((C, Cr), lambda b: (0, 0)),
                pl.BlockSpec((Cr, C), lambda b: (0, 0)),
            ],
            out_specs=pl.BlockSpec((Bb, C, HW_pad), lambda b: (b, 0, 0)),
        ),
        compiler_params=pltpu.CompilerParams(
            dimension_semantics=("parallel",),
            vmem_limit_bytes=vmem_limit,
        ),
    )(x_flat, w1, w2)

    if HW_pad != HW:
        out_flat = out_flat[:, :, :HW]
    return out_flat.reshape(B, C, H, W)


def channel_gate_ref(x_nchw, w1, w2):
    """Pure-JAX reference mirroring the PyTorch forward (f32)."""
    B, C, H, W = x_nchw.shape
    xf = x_nchw.astype(jnp.float32).reshape(B, C, H * W)
    avg = jnp.mean(xf, axis=-1)
    mx = jnp.max(xf, axis=-1)

    def mlp(p):
        return jnp.maximum(p @ w1, 0.0) @ w2

    scale = jax.nn.sigmoid(mlp(avg) + mlp(mx))
    return xf.reshape(B, C, H, W) * scale[:, :, None, None]


if __name__ == "__main__":
    key = jax.random.PRNGKey(0)
    kx, k1, k2, kx2 = jax.random.split(key, 4)

    # --- Test 1: gate_channels=64, reduction_ratio=16 (hidden=4), lane-aligned HW.
    B, C, H, W = 8, 64, 16, 16
    Cr = C // 16
    x = jax.random.normal(kx, (B, C, H, W), dtype=jnp.float32)
    # nn.Conv2d(C, Cr, 1) weight is (Cr, C, 1, 1); stored transposed (C, Cr)
    # so the kernel does pooled @ w1 directly (and (Cr, C) for w2).
    w1 = jax.random.normal(k1, (C, Cr), dtype=jnp.float32) * 0.1
    w2 = jax.random.normal(k2, (Cr, C), dtype=jnp.float32) * 0.1

    out = jax.block_until_ready(channel_gate(x, w1, w2))
    ref = channel_gate_ref(x, w1, w2)
    assert out.shape == (B, C, H, W)
    assert jnp.allclose(out, ref, atol=1e-5, rtol=1e-5)

    # --- Test 2: non-128-multiple spatial size (HW = 49 -> padded to 128),
    #     exercising the -inf max-pool mask and real-HW averaging.
    B2, C2, H2, W2 = 2, 32, 7, 7
    Cr2 = C2 // 16
    x2 = jax.random.normal(kx2, (B2, C2, H2, W2), dtype=jnp.float32)
    w1b = jax.random.normal(k1, (C2, Cr2), dtype=jnp.float32) * 0.1
    w2b = jax.random.normal(k2, (Cr2, C2), dtype=jnp.float32) * 0.1

    out2 = jax.block_until_ready(channel_gate(x2, w1b, w2b))
    ref2 = channel_gate_ref(x2, w1b, w2b)
    assert out2.shape == (B2, C2, H2, W2)
    assert jnp.allclose(out2, ref2, atol=1e-5, rtol=1e-5)

    # --- Test 3: bf16 I/O (halves HBM traffic on this bandwidth-bound kernel);
    #     pool/MLP still run in f32 inside the kernel.
    x_bf16 = x.astype(jnp.bfloat16)
    out3 = jax.block_until_ready(channel_gate(x_bf16, w1, w2))
    ref3 = channel_gate_ref(x_bf16.astype(jnp.float32), w1, w2)
    assert out3.shape == (B, C, H, W)
    assert jnp.allclose(out3.astype(jnp.float32), ref3, atol=6e-2, rtol=5e-2)

    print("KERNEL_OK")
</pallas_src>

<mosaic_0001>
module attributes {stable_mosaic.version = 11 : i64} {
  func.func @channel_gate_kernel(%arg0: i32, %arg1: memref<4x64x256xf32, #tpu.memory_space<vmem>>, %arg2: memref<64x4xf32, #tpu.memory_space<vmem>>, %arg3: memref<4x64xf32, #tpu.memory_space<vmem>>, %arg4: memref<4x64x256xf32, #tpu.memory_space<vmem>>) attributes {dimension_semantics = [#tpu.dimension_semantics<parallel>], iteration_bounds = array<i64: 2>, scalar_prefetch = 0 : i64, scratch_operands = 0 : i64, tpu.core_type = #tpu.core_type<tc>, window_params = [{transform_indices = @transform_0, window_bounds = array<i64: 4, 64, 256>}, {pipeline_mode = #tpu.pipeline_mode<synchronous>, transform_indices = @transform_1, window_bounds = array<i64: 64, 4>}, {pipeline_mode = #tpu.pipeline_mode<synchronous>, transform_indices = @transform_2, window_bounds = array<i64: 4, 64>}, {transform_indices = @transform_3, window_bounds = array<i64: 4, 64, 256>}]} {
    %c0 = arith.constant 0 : index
    %c0_0 = arith.constant 0 : index
    %c0_1 = arith.constant 0 : index
    %0 = vector.load %arg1[%c0, %c0_0, %c0_1] : memref<4x64x256xf32, #tpu.memory_space<vmem>>, vector<4x64x256xf32>
    %cst = arith.constant dense<0.000000e+00> : vector<4x64xf32>
    %1 = vector.multi_reduction <add>, %0, %cst [2] : vector<4x64x256xf32> to vector<4x64xf32>
    %cst_2 = arith.constant dense<0xFF800000> : vector<4x64xf32>
    %2 = vector.multi_reduction <maximumf>, %0, %cst_2 [2] : vector<4x64x256xf32> to vector<4x64xf32>
    %cst_3 = arith.constant 3.906250e-03 : f32
    %3 = vector.broadcast %cst_3 : f32 to vector<4x64xf32>
    %4 = arith.mulf %1, %3 : vector<4x64xf32>
    %5 = tpu.concatenate %4, %2 in 0 : vector<4x64xf32>, vector<4x64xf32> -> vector<8x64xf32>
    %c0_4 = arith.constant 0 : index
    %c0_5 = arith.constant 0 : index
    %6 = vector.load %arg2[%c0_4, %c0_5] : memref<64x4xf32, #tpu.memory_space<vmem>>, vector<64x4xf32>
    %cst_6 = arith.constant dense<0.000000e+00> : vector<8x4xf32>
    %7 = tpu.matmul %5, %6, %cst_6 {dimension_numbers = #tpu.dot_dimension_numbers<[1], [0], [0], [1], [0, 0, 1, 1], [], []>} : vector<8x64xf32>, vector<64x4xf32>, vector<8x4xf32> -> vector<8x4xf32>
    %cst_7 = arith.constant 0.000000e+00 : f32
    %8 = vector.broadcast %cst_7 : f32 to vector<8x4xf32>
    %9 = arith.maximumf %7, %8 : vector<8x4xf32>
    %c0_8 = arith.constant 0 : index
    %c0_9 = arith.constant 0 : index
    %10 = vector.load %arg3[%c0_8, %c0_9] : memref<4x64xf32, #tpu.memory_space<vmem>>, vector<4x64xf32>
    %cst_10 = arith.constant dense<0.000000e+00> : vector<8x64xf32>
    %11 = tpu.matmul %9, %10, %cst_10 {dimension_numbers = #tpu.dot_dimension_numbers<[1], [0], [0], [1], [0, 0, 1, 1], [], []>} : vector<8x4xf32>, vector<4x64xf32>, vector<8x64xf32> -> vector<8x64xf32>
    %12 = vector.extract_strided_slice %11 {offsets = [0, 0], sizes = [4, 64], strides = [1, 1]} : vector<8x64xf32> to vector<4x64xf32>
    %13 = vector.extract_strided_slice %11 {offsets = [4, 0], sizes = [4, 64], strides = [1, 1]} : vector<8x64xf32> to vector<4x64xf32>
    %14 = arith.addf %12, %13 : vector<4x64xf32>
    %15 = arith.negf %14 : vector<4x64xf32>
    %16 = math.exp %15 : vector<4x64xf32>
    %cst_11 = arith.constant 1.000000e+00 : f32
    %17 = vector.broadcast %cst_11 : f32 to vector<4x64xf32>
    %18 = arith.addf %17, %16 : vector<4x64xf32>
    %19 = arith.divf %17, %18 : vector<4x64xf32>
    %c0_12 = arith.constant 0 : index
    %c0_13 = arith.constant 0 : index
    %c0_14 = arith.constant 0 : index
    %20 = vector.load %arg1[%c0_12, %c0_13, %c0_14] : memref<4x64x256xf32, #tpu.memory_space<vmem>>, vector<4x64x256xf32>
    %21 = vector.shape_cast %19 : vector<4x64xf32> to vector<4x64x1xf32>
    %22 = vector.broadcast %21 : vector<4x64x1xf32> to vector<4x64x256xf32>
    %23 = arith.mulf %20, %22 : vector<4x64x256xf32>
    %c0_15 = arith.constant 0 : index
    %c0_16 = arith.constant 0 : index
    %c0_17 = arith.constant 0 : index
    %24 = vector.load %arg4[%c0_15, %c0_16, %c0_17] : memref<4x64x256xf32, #tpu.memory_space<vmem>>, vector<4x64x256xf32>
    tpu.vector_store %arg4[%c0_15, %c0_16, %c0_17], %23 {strides = array<i32>} : memref<4x64x256xf32, #tpu.memory_space<vmem>>, vector<4x64x256xf32>,
    return
  }
  func.func @transform_0(%arg0: i32) -> (i32, i32, i32) {
    %c0_i32 = arith.constant 0 : i32
    %c0_i32_0 = arith.constant 0 : i32
    %c0_i32_1 = arith.constant 0 : i32
    return %arg0, %c0_i32, %c0_i32_0 : i32, i32, i32
  }
  func.func @transform_1(%arg0: i32) -> (i32, i32) {
    %c0_i32 = arith.constant 0 : i32
    %c0_i32_0 = arith.constant 0 : i32
    %c0_i32_1 = arith.constant 0 : i32
    return %c0_i32, %c0_i32_0 : i32, i32
  }
  func.func @transform_2(%arg0: i32) -> (i32, i32) {
    %c0_i32 = arith.constant 0 : i32
    %c0_i32_0 = arith.constant 0 : i32
    %c0_i32_1 = arith.constant 0 : i32
    return %c0_i32, %c0_i32_0 : i32, i32
  }
  func.func @transform_3(%arg0: i32) -> (i32, i32, i32) {
    %c0_i32 = arith.constant 0 : i32
    %c0_i32_0 = arith.constant 0 : i32
    %c0_i32_1 = arith.constant 0 : i32
    return %arg0, %c0_i32, %c0_i32_0 : i32, i32, i32
  }
}

</mosaic_0001>

<bundles_post_ra>
// kernel: tpu_custom_call.1
= control target key start
LH: loop header
LB: loop body
LE: loop exit
PB: predicated region body
PF: predicated region fallthrough
CT: control target
= control target key end

     0   :  { %8 = vsyncpa [#allocation3], 0  ;;  %s2494_s0 = inlined_call_operand.hbm [shape: f32[8,64,256], index: 0, kind: input, shape index: {}]   ;;  %s2495_s1 = inlined_call_operand.vmem [shape: f32[64,4], index: 1, kind: input, shape index: {}]   ;;  %s2496_s2 = inlined_call_operand.vmem [shape: f32[4,64], index: 2, kind: input, shape index: {}]   ;;  %s2497_s3 = inlined_call_operand.hbm [shape: f32[8,64,256], index: 3, kind: output, shape index: {}]  }
   0x1   :  { %10 = vsyncpa [#allocation3 + $0x1], 0 }
   0x2   :  { %11 = vsyncpa [#allocation4], 0 }
   0x3   :  { %13 = vsyncpa [#allocation4 + $0x1], 0  ;;  %s1718_s12 = smov 0   ;;  %s1720_s13 = smov 0  }
   0x4   :  { %s1722_s14 = smov 0   ;;  %s1724_s15 = smov 0  }
   0x5 LB: > { %s1739_s16 = sadd.s32 4294967295, %s1687_s15   ;;  %s1415_s17 = sadd.s32 4294967294, %s1687_s15   ;;  %s1687_s15 = sphi %s1724_s15, %s2510_s15   ;;  %s1683_s14 = sphi %s1722_s14, %s2509_s14   ;;  %s1679_s13 = sphi %s1720_s13, %s2508_s13   ;;  %s1675_s12 = sphi %s1718_s12, %s2507_s12  }
   0x6   : > { %s1743_s18 = sadd.s32 1, %s1687_s15   ;;  %s26_s19 = sadd.s32 1, %s1683_s14 }
   0x7   : > { %s23_s20 = ssub.s32 %s1687_s15, %s1743_s18  ;;  %p33_p0 = scmp.ne.s32.totalorder %s1683_s14, %s1679_s13 }
   0x8   : > { %p24_p1 = scmp.eq.s32.totalorder %s23_s20, 0  ;;  %p34_p2 = scmp.eq.s32.totalorder %s1687_s15, 0 }
   0x9   : > { %p39_p3 = scmp.ne.s32.totalorder %s1679_s13, %s1675_s12  ;;  %p40_p4 = scmp.eq.s32.totalorder %s1739_s16, 0 }
   0xa   : > { %s1755_s21 = scalar_select %p24_p1, %s1683_s14, %s26_s19  }
   0xb   : > { %p1757_p5 = por %p34_p2, %p33_p0  ;;  %p1761_p6 = por %p40_p4, %p39_p3 }
   0xc   : > { %p105_p7 = scmp.eq.s32.totalorder %s1739_s16, 1  ;;  %p111_p8 = scmp.eq.s32.totalorder %s1415_s17, 1 }
   0xd   : > { %p1498_p10 = scmp.lt.s32.totalorder %s1687_s15, 2  ;;  %s137_s26 = sand.u32 1, %s1683_s14  }
   0xe   : > { %p1768_p11 = por %p105_p7, %p33_p0  ;;  %p1772_p12 = por %p111_p8, %p39_p3 }
   0xf   : > { %s1436_s27 = sshll.u32 %s1687_s15, 13  ;;  %s1418_s28 = sshll.u32 %s137_s26, 9 }
  0x10   : > { %s2501_s24 = scalar_select %p1768_p11, 1, 0 }
  0x11   : > { %s2502_s25 = scalar_select %p1772_p12, 1, 0 }
  0x12   : > { %s1781_s4 = scalar_lea.hbm %s2494_s0, %s1436_s27  ;;  %s141_s5 = scalar_lea.vmem [#allocation2], %s1418_s28 }
  0x13   : > { %s149_s6 = sshll.u32 %s141_s5, 4  ;;  %p1785_p13 = pnand %p1498_p10, %p1757_p5  ;;  %s1789_s6 = int_to_ptr.vmem [resolvable:$true] %s149_s6 }
  0x14   : > { %s1791_s8 = scalar_lea.sflag [#allocation3], %s137_s26  ;;  %s1591_s9 = scalar_lea.hbm %s1781_s4, 8192 }
  0x15   : > { %p1592_p0 = scmp.ne.s32.totalorder %s1781_s4, %s1591_s9  ;;  %p1593_p1 = pneg %p1785_p13 }
  0x16   : > { %s1596_s17 = scalar_lea.hbm %s2494_s0, 16384  ;;  %p1597_p4 = scmp.lt.u32.totalorder %s1781_s4, %s2494_s0 }
  0x17   : > { %p1594_p2 = pnand %p1593_p1, %p1592_p0  ;;  %p1598_p5 = scmp.lt.u32.totalorder %s1596_s17, %s1591_s9 }
  0x18   : > { %p1600_p8 = scmp.lt.u32.totalorder %s1591_s9, %s1781_s4 }
  0x19   : > { %p1595_p3 = pneg %p1594_p2  ;;  %p1599_p7 = por %p1598_p5, %p1597_p4 }
  0x1b   : > { %p1601_p10 = por %p1600_p8, %p1599_p7 }
  0x1d   : > { %p1602_p9 = pnand %p1601_p10, %p1595_p3 }
  0x1f   : > { %1605 = shalt.err (!%p1602_p9)
}
  0x20   : > { %s1606_s22 = scalar_lea.vmem %s1789_s6, 8192  ;;  %s1689_s26 = smov [#allocation2]  }
  0x21   : > { %p1607_p0 = scmp.ne.s32.totalorder %s1789_s6, %s1606_s22  ;;  %s1611_s27 = sshll.u32 %s1689_s26, 4  ;;  %s1612_s27 = int_to_ptr.vmem [resolvable:$false] %s1611_s27 }
  0x22   : > { %s1613_s28 = scalar_lea.vmem %s1612_s27, 16384  ;;  %p1614_p11 = scmp.lt.s32.totalorder %s1789_s6, %s1612_s27 }
  0x23   : > { %p1609_p2 = pnand %p1607_p0, %p1593_p1  ;;  %p1615_p4 = scmp.lt.s32.totalorder %s1613_s28, %s1606_s22 }
  0x25   : > { %p1610_p12 = pneg %p1609_p2  ;;  %p1616_p5 = por %p1615_p4, %p1614_p11 }
  0x27   : > { %p1617_p7 = pnand %p1616_p5, %p1610_p12 }
  0x29   : > { %1620 = shalt.err (!%p1617_p7)
}
  0x2a   : > { %s1690_s29 = smov 256   ;;  %s1691_s30 = smov 16  }
  0x2b   : > { %1493 = dma.hbm_to_vmem [thread:$0]  (!%p1785_p13), %s1781_s4, 8192, %s1789_s6, %s1791_s8, %s1690_s29, %s1690_s29, %s1691_s30  }
  0x2c   : > { %p1422_p9 = scmp.ge.s32.totalorder %s1687_s15, 1  ;;  %p157_p1 = scmp.lt.s32.totalorder %s1687_s15, 3 }
  0x2e   : > { %p158_p3 = pnand %p1422_p9, %p157_p1 }
  0x2f   : > { %s1822_s5 = sand.u32 (!%p158_p3), 1, %s1679_s13  }
  0x30   : > { %161 = sbr.rel (%p158_p3) target bundleno = 986 (0x3da), region = 32  ;;  %s1423_s9 = sshll.u32 (!%p158_p3), %s1822_s5, 9 }
  0x31   : > { %s164_s10 = scalar_lea.sflag (!%p158_p3), [#allocation3], %s1822_s5  ;;  %s1828_s11 = scalar_lea.vmem (!%p158_p3), [#allocation2], %s1423_s9 }
  0x37   : > { %1666 = dma.done.wait (%p1761_p6), %s164_s10, 8192  }
  0x38   : > { %1668 = vsyncadd (%p1761_p6), %s164_s10, 4294959104  ;;  %v208_v0 = vld [vmem:[%s1828_s11 + $0x80] sm:$0xff]  ;;  %v209_v1 = vld [vmem:[%s1828_s11 + $0x88] sm:$0xff]  ;;  %vm1693_vm0 = vmmov 0   ;;  %vm523_vm1 = vcmask 130112   ;;  %vm530_vm2 = vcmask 195712  }
  0x39   : > { %v192_v2 = vld [vmem:[%s1828_s11] sm:$0xff]  ;;  %v280_v3 = vadd.f32 %v209_v1, %v208_v0  ;;  %v193_v4 = vld [vmem:[%s1828_s11 + $0x8] sm:$0xff]  ;;  %v1839_v5 = vld [vmem:[%s1828_s11 + $0x90] sm:$0xff]  ;;  %v376_v40 = vmax.f32 %v208_v0, %v209_v1  ;;  %vm537_vm3 = vcmask 261312   ;;  %vm544_vm4 = vcmask 326912   ;;  %s2317_s7 = scalar_lea.vmem [#allocation5], %s1423_s9 }
  0x3a   : > { %v211_v6 = vld [vmem:[%s1828_s11 + $0x98] sm:$0xff]  ;;  %v256_v7 = vadd.f32 %v193_v4, %v192_v2  ;;  %v194_v8 = vld [vmem:[%s1828_s11 + $0x10] sm:$0xff]  ;;  %v1846_v12 = vld [vmem:[%s1828_s11 + $0xa0] sm:$0xff]  ;;  %v352_v38 = vmax.f32 %v192_v2, %v193_v4  ;;  %vm551_vm5 = vcmask 392512   ;;  %vm558_vm6 = vcmask 458112   ;;  %s1438_s9 = sshll.u32 %s1739_s16, 13 }
  0x3b   : > { %v195_v9 = vld [vmem:[%s1828_s11 + $0x18] sm:$0xff]  ;;  %281 = vadd.xlane.f32.xlu1 %v280_v3  ;;  %v283_v10 = vadd.f32 %v211_v6, %v1839_v5  ;;  %v1849_v13 = vld [vmem:[%s1828_s11 + $0xa8] sm:$0xff]  ;;  %v196_v14 = vld [vmem:[%s1828_s11 + $0x20] sm:$0xff]  ;;  %v379_v45 = vmax.f32 %v1839_v5, %v211_v6  ;;  %vm565_vm7 = vcmask 523712   ;;  %vm684_vm8 = vcmask 1041409   ;;  %s1342_s8 = sshll.u32 %s2317_s7, 4  ;;  %s2444_s20 = scalar_lea.hbm %s2497_s3, %s1438_s9  ;;  %s2446_s8 = int_to_ptr.vmem [resolvable:$true] %s1342_s8 }
  0x3c   : > { %257 = vadd.xlane.f32.xlu0 %v256_v7  ;;  %v259_v11 = vadd.f32 %v195_v9, %v194_v8  ;;  %v197_v15 = vld [vmem:[%s1828_s11 + $0x28] sm:$0xff]  ;;  %v286_v16 = vadd.f32 %v1849_v13, %v1846_v12  ;;  %v1856_v18 = vld [vmem:[%s1828_s11 + $0x110] sm:$0xff]  ;;  %v1859_v19 = vld [vmem:[%s1828_s11 + $0x118] sm:$0xff]  ;;  %v355_v41 = vmax.f32 %v194_v8, %v195_v9  ;;  %v382_v57 = vmax.f32 %v1846_v12, %v1849_v13  ;;  %s1328_s16 = scalar_lea.sflag [#allocation4], %s1822_s5  ;;  %s1621_s22 = scalar_lea.vmem %s2446_s8, 8192 }
  0x3d   : > { %v262_v17 = vadd.f32 %v197_v15, %v196_v14  ;;  %v224_v20 = vld [vmem:[%s1828_s11 + $0x100] sm:$0xff]  ;;  %v225_v21 = vld [vmem:[%s1828_s11 + $0x108] sm:$0xff]  ;;  %v307_v22 = vadd.f32 %v1859_v19, %v1856_v18  ;;  %v1866_v24 = vld [vmem:[%s1828_s11 + $0xb0] sm:$0xff]  ;;  %v358_v54 = vmax.f32 %v196_v14, %v197_v15  ;;  %v403_v61 = vmax.f32 %v1856_v18, %v1859_v19  ;;  %p1622_p6 = scmp.ne.s32.totalorder %s2446_s8, %s1621_s22  ;;  %p2504_p11 = scmp.ne.s32.totalorder %s2501_s24, 0 }
  0x3e   : > { %v304_v23 = vadd.f32 %v225_v21, %v224_v20  ;;  %v1869_v25 = vld [vmem:[%s1828_s11 + $0xb8] sm:$0xff]  ;;  %v1872_v26 = vld [vmem:[%s1828_s11 + $0x30] sm:$0xff]  ;;  %v1882_v30 = vld [vmem:[%s1828_s11 + $0x180] sm:$0xff]  ;;  %v400_v56 = vmax.f32 %v224_v20, %v225_v21  ;;  %vm686_vm9 = vcmask 1042434   ;;  %vm879_vm10 = vcmask 1045509   ;;  %s1695_s26 = smov [#allocation5]  }
  0x3f   : > { %284 = vadd.xlane.f32.xlu1 %v283_v10  ;;  %v1875_v27 = vld [vmem:[%s1828_s11 + $0x38] sm:$0xff]  ;;  %v289_v28 = vadd.f32 %v1869_v25, %v1866_v24  ;;  %v1885_v31 = vld [vmem:[%s1828_s11 + $0x188] sm:$0xff]  ;;  %v1888_v32 = vld [vmem:[%s1828_s11 + $0x120] sm:$0xff]  ;;  %v385_v9 = vmax.f32 %v1866_v24, %v1869_v25  ;;  %vm688_vm11 = vcmask 1043459   ;;  %vm881_vm12 = vcmask 1046534   ;;  %p1623_p12 = pnand %p1622_p6, %p2504_p11  ;;  %s1625_s27 = sshll.u32 %s1695_s26, 4  ;;  %s1626_s27 = int_to_ptr.vmem [resolvable:$false] %s1625_s27 }
  0x40   : > { %260 = vadd.xlane.f32.xlu0 %v259_v11  ;;  %v265_v29 = vadd.f32 %v1875_v27, %v1872_v26  ;;  %v1891_v33 = vld [vmem:[%s1828_s11 + $0x128] sm:$0xff]  ;;  %v328_v34 = vadd.f32 %v1885_v31, %v1882_v30  ;;  %v1898_v36 = vld [vmem:[%s1828_s11 + $0x190] sm:$0xff]  ;;  %v1901_v37 = vld [vmem:[%s1828_s11 + $0x198] sm:$0xff]  ;;  %v361_v6 = vmax.f32 %v1872_v26, %v1875_v27  ;;  %v424_v11 = vmax.f32 %v1882_v30, %v1885_v31  ;;  %s1627_s28 = scalar_lea.vmem %s1626_s27, 16384  ;;  %p1628_p8 = scmp.lt.s32.totalorder %s2446_s8, %s1626_s27 }
  0x41   : > { %v310_v35 = vadd.f32 %v1891_v33, %v1888_v32  ;;  %v331_v39 = vadd.f32 %v1901_v37, %v1898_v36  ;;  %v1906_v42 = vld [vmem:[%s1828_s11 + $0x40] sm:$0xff]  ;;  %v1909_v43 = vld [vmem:[%s1828_s11 + $0x48] sm:$0xff]  ;;  %v1915_v46 = vld [vmem:[%s1828_s11 + $0x130] sm:$0xff]  ;;  %v406_v8 = vmax.f32 %v1888_v32, %v1891_v33  ;;  %v427_v10 = vmax.f32 %v1898_v36, %v1901_v37  ;;  %p1624_p13 = pneg %p1623_p12  ;;  %p1629_p10 = scmp.lt.s32.totalorder %s1627_s28, %s1621_s22 }
  0x42   : > { %v268_v44 = vadd.f32 %v1909_v43, %v1906_v42  ;;  %v1918_v47 = vld [vmem:[%s1828_s11 + $0x138] sm:$0xff]  ;;  %v1921_v48 = vld [vmem:[%s1828_s11 + $0xc0] sm:$0xff]  ;;  %v1924_v49 = vld [vmem:[%s1828_s11 + $0xc8] sm:$0xff]  ;;  %v364_v25 = vmax.f32 %v1906_v42, %v1909_v43  ;;  %vm883_vm13 = vcmask 1047559   ;;  %vm886_vm14 = vcmask 1043456  }
  0x43   : > { %287 = vadd.xlane.f32.xlu1 %v286_v16  ;;  %v313_v50 = vadd.f32 %v1918_v47, %v1915_v46  ;;  %v292_v51 = vadd.f32 %v1924_v49, %v1921_v48  ;;  %v1931_v52 = vld [vmem:[%s1828_s11 + $0x1a0] sm:$0xff]  ;;  %v1934_v53 = vld [vmem:[%s1828_s11 + $0x1a8] sm:$0xff]  ;;  %v1941_v58 = vld [vmem:[%s1828_s11 + $0x50] sm:$0xff]  ;;  %v388_v24 = vmax.f32 %v1921_v48, %v1924_v49  ;;  %v409_v27 = vmax.f32 %v1915_v46, %v1918_v47  ;;  %p1630_p0 = por %p1629_p10, %p1628_p8 }
  0x44   : > { %263 = vadd.xlane.f32.xlu0 %v262_v17  ;;  %v334_v55 = vadd.f32 %v1934_v53, %v1931_v52  ;;  %v1944_v59 = vld [vmem:[%s1828_s11 + $0x58] sm:$0xff]  ;;  %v1951_v62 = vld [vmem:[%s1828_s11 + $0x140] sm:$0xff]  ;;  %v1954_v63 = vld [vmem:[%s1828_s11 + $0x148] sm:$0xff]  ;;  %v430_v26 = vmax.f32 %v1931_v52, %v1934_v53  ;;  %vm896_vm15 = vcmask 523264  }
  0x45   : > { %v271_v60 = vadd.f32 %v1944_v59, %v1941_v58  ;;  %v1957_v0 = vld [vmem:[%s1828_s11 + $0xd0] sm:$0xff]  ;;  %v1960_v1 = vld [vmem:[%s1828_s11 + $0xd8] sm:$0xff]  ;;  %v316_v2 = vadd.f32 %v1954_v63, %v1951_v62  ;;  %v1985_v12 = vld [vmem:[%s1828_s11 + $0xe0] sm:$0xff]  ;;  %p1631_p2 = pnand %p1630_p0, %p1624_p13 }
  0x46   : > { %v295_v3 = vadd.f32 %v1960_v1, %v1957_v0  ;;  %v1967_v4 = vld [vmem:[%s1828_s11 + $0x1b0] sm:$0xff]  ;;  %v1970_v5 = vld [vmem:[%s1828_s11 + $0x1b8] sm:$0xff]  ;;  %v1988_v13 = vld [vmem:[%s1828_s11 + $0xe8] sm:$0xff] }
  0x47   : > { %308 = vadd.xlane.f32.xlu1 %v307_v22  ;;  %v337_v7 = vadd.f32 %v1970_v5, %v1967_v4  ;;  %v1991_v14 = vld [vmem:[%s1828_s11 + $0x60] sm:$0xff]  ;;  %v1994_v15 = vld [vmem:[%s1828_s11 + $0x68] sm:$0xff]  ;;  %v298_v16 = vadd.f32 %v1988_v13, %v1985_v12  ;;  %v234_v20 = vld [vmem:[%s1828_s11 + $0x150] sm:$0xff]  ;;  %v394_v52 = vmax.f32 %v1985_v12, %v1988_v13 }
  0x48   : > { %305 = vadd.xlane.f32.xlu0 %v304_v23  ;;  %v274_v17 = vadd.f32 %v1994_v15, %v1991_v14  ;;  %v248_v18 = vld [vmem:[%s1828_s11 + $0x1c0] sm:$0xff]  ;;  %v249_v19 = vld [vmem:[%s1828_s11 + $0x1c8] sm:$0xff]  ;;  %v235_v21 = vld [vmem:[%s1828_s11 + $0x158] sm:$0xff]  ;;  %v370_v53 = vmax.f32 %v1991_v14, %v1994_v15 }
  0x49   : > { %v340_v22 = vadd.f32 %v249_v19, %v248_v18  ;;  %v319_v23 = vadd.f32 %v235_v21, %v234_v20  ;;  %v2019_v30 = vld [vmem:[%s1828_s11 + $0x70] sm:$0xff]  ;;  %v2022_v31 = vld [vmem:[%s1828_s11 + $0x78] sm:$0xff]  ;;  %v2031_v36 = vld [vmem:[%s1828_s11 + $0x160] sm:$0xff] }
  0x4a   : > { %v277_v33 = vadd.f32 %v2022_v31, %v2019_v30  ;;  %v2034_v37 = vld [vmem:[%s1828_s11 + $0x168] sm:$0xff]  ;;  %v252_v46 = vld [vmem:[%s1828_s11 + $0x1e0] sm:$0xff]  ;;  %v2049_v48 = vld [vmem:[%s1828_s11 + $0x170] sm:$0xff] }
  0x4b   : > { %290 = vadd.xlane.f32.xlu1 %v289_v28  ;;  %v2013_v28 = vld [vmem:[%s1828_s11 + $0xf0] sm:$0xff]  ;;  %v253_v47 = vld [vmem:[%s1828_s11 + $0x1e8] sm:$0xff]  ;;  %v2052_v49 = vld [vmem:[%s1828_s11 + $0x178] sm:$0xff] }
  0x4c   : > { %266 = vadd.xlane.f32.xlu0 %v265_v29  ;;  %v2016_v29 = vld [vmem:[%s1828_s11 + $0xf8] sm:$0xff] }
  0x4d   : > { %v301_v32 = vadd.f32 %v2016_v29, %v2013_v28 }
  0x4f   : > { %329 = vadd.xlane.f32.xlu1 %v328_v34  ;;  %v250_v34 = vld [vmem:[%s1828_s11 + $0x1d0] sm:$0xff] }
  0x50   : > { %311 = vadd.xlane.f32.xlu0 %v310_v35  ;;  %v251_v35 = vld [vmem:[%s1828_s11 + $0x1d8] sm:$0xff] }
  0x53   : > { %353 = vmax.xlane.f32.xlu1 %v352_v38  ;;  %v343_v38 = vadd.f32 %v251_v35, %v250_v34 }
  0x54   : > { %332 = vadd.xlane.f32.xlu0 %v331_v39  ;;  %v322_v39 = vadd.f32 %v2034_v37, %v2031_v36 }
  0x57   : > { %377 = vmax.xlane.f32.xlu1 %v376_v40  ;;  %v391_v40 = vmax.f32 %v1957_v0, %v1960_v1  ;;  %v421_v0 = vmax.f32 %v2049_v48, %v2052_v49  ;;  %v439_v1 = vmax.f32 %v250_v34, %v251_v35 }
  0x58   : > { %356 = vmax.xlane.f32.xlu0 %v355_v41  ;;  %v367_v41 = vmax.f32 %v1941_v58, %v1944_v59 }
  0x5b   : > { %269 = vadd.xlane.f32.xlu1 %v268_v44  ;;  %v433_v44 = vmax.f32 %v1967_v4, %v1970_v5  ;;  %v888_v4 = vld [vmem:[%s2495_s1] sm:$0xff]  ;;  %v889_v5 = vld [vmem:[%s2495_s1 + $0x8] sm:$0xff] }
  0x5c   : > { %380 = vmax.xlane.f32.xlu0 %v379_v45  ;;  %v412_v45 = vmax.f32 %v1951_v62, %v1954_v63  ;;  %v418_v62 = vmax.f32 %v2031_v36, %v2034_v37  ;;  %v397_v63 = vmax.f32 %v2013_v28, %v2016_v29 }
  0x5f   : > { %314 = vadd.xlane.f32.xlu1 %v313_v50  ;;  %v346_v50 = vadd.f32 %v253_v47, %v252_v46 }
  0x60   : > { %293 = vadd.xlane.f32.xlu0 %v292_v51  ;;  %v325_v51 = vadd.f32 %v2052_v49, %v2049_v48 }
  0x63   : > { %359 = vmax.xlane.f32.xlu1 %v358_v54  ;;  %v436_v54 = vmax.f32 %v248_v18, %v249_v19 }
  0x64   : > { %335 = vadd.xlane.f32.xlu0 %v334_v55  ;;  %v415_v55 = vmax.f32 %v234_v20, %v235_v21  ;;  %v894_v20 = vld [vmem:[%s2495_s1 + $0x30] sm:$0xff]  ;;  %v895_v21 = vld [vmem:[%s2495_s1 + $0x38] sm:$0xff] }
  0x67   : > { %401 = vmax.xlane.f32.xlu1 %v400_v56  ;;  %v254_v56 = vld [vmem:[%s1828_s11 + $0x1f0] sm:$0xff] }
  0x68   : > { %383 = vmax.xlane.f32.xlu0 %v382_v57  ;;  %v255_v57 = vld [vmem:[%s1828_s11 + $0x1f8] sm:$0xff] }
  0x6b   : > { %272 = vadd.xlane.f32.xlu1 %v271_v60  ;;  %v373_v60 = vmax.f32 %v2019_v30, %v2022_v31 }
  0x6c   : > { %404 = vmax.xlane.f32.xlu0 %v403_v61  ;;  %v349_v61 = vadd.f32 %v255_v57, %v254_v56 }
  0x6f   : > { %317 = vadd.xlane.f32.xlu1 %v316_v2  ;;  %v445_v2 = vmax.f32 %v254_v56, %v255_v57 }
  0x70   : > { %296 = vadd.xlane.f32.xlu0 %v295_v3  ;;  %v442_v3 = vmax.f32 %v252_v46, %v253_v47 }
  0x73   : > { %362 = vmax.xlane.f32.xlu1 %v361_v6  ;;  %v1475_v6 = vpack.c.bf16 %v889_v5, %v888_v4 }
  0x74   : > { %338 = vadd.xlane.f32.xlu0 %v337_v7  ;;  %v1692_v7 = vmov 0.0|0.0  }
  0x75   : > { %1474 = vmatprep.subr.bf16.mxu0 %v1692_v7 }
  0x76   : > { %1476 = vmatpush3.bf16.msra.mxu0 %v1475_v6 }
  0x77   : > { %407 = vmax.xlane.f32.xlu1 %v406_v8  ;;  %1477 = vmatprep.subr.bf16.mxu0 %v1692_v7  ;;  %v890_v8 = vld [vmem:[%s2495_s1 + $0x10] sm:$0xff] }
  0x78   : > { %386 = vmax.xlane.f32.xlu0 %v385_v9  ;;  %v891_v9 = vld [vmem:[%s2495_s1 + $0x18] sm:$0xff] }
  0x7b   : > { %428 = vmax.xlane.f32.xlu1 %v427_v10  ;;  %v1478_v10 = vpack.c.bf16 %v891_v9, %v890_v8 }
  0x7c   : > { %425 = vmax.xlane.f32.xlu0 %v424_v11  ;;  %v512_v11 = vlaneseq }
  0x7d   : > { %1479 = vmatpush3.bf16.msra.mxu0 %v1478_v10 }
  0x7e   : > { %1480 = vmatprep.subr.bf16.mxu0 %v1692_v7  ;;  %v2088_v19 = vand.u32 127, %v512_v11 }
  0x7f   : > { %299 = vadd.xlane.f32.xlu1 %v298_v16  ;;  %v892_v16 = vld [vmem:[%s2495_s1 + $0x20] sm:$0xff] }
  0x80   : > { %275 = vadd.xlane.f32.xlu0 %v274_v17  ;;  %v893_v17 = vld [vmem:[%s2495_s1 + $0x28] sm:$0xff]  ;;  %v525_v35 = vadd.s32 4294967280, %v2088_v19 }
  0x81   : > { %v1481_v18 = vpack.c.bf16 %v893_v17, %v892_v16 }
  0x83   : > { %341 = vadd.xlane.f32.xlu1 %v340_v22  ;;  %1482 = vmatpush3.bf16.msra.mxu0 %v1481_v18  ;;  %v2096_v22 = vshrl.u32 %v512_v11, 7 }
  0x84   : > { %320 = vadd.xlane.f32.xlu0 %v319_v23  ;;  %1483 = vmatprep.subr.bf16.mxu0 %v1692_v7  ;;  %v518_v23 = vadd.s32 4294967288, %v2088_v19 }
  0x85   : > { %v2110_v47 = vsub.s32 %v525_v35, %v2096_v22 }
  0x86   : > { %v2104_v34 = vsub.s32 %v518_v23, %v2096_v22 }
  0x87   : > { %389 = vmax.xlane.f32.xlu1 %v388_v24  ;;  %v1484_v24 = vpack.c.bf16 %v895_v21, %v894_v20 }
  0x88   : > { %365 = vmax.xlane.f32.xlu0 %v364_v25 }
  0x89   : > { %1485 = vmatpush3.bf16.msra.mxu0 %v1484_v24 }
  0x8b   : > { %431 = vmax.xlane.f32.xlu1 %v430_v26 }
  0x8c   : > { %410 = vmax.xlane.f32.xlu0 %v409_v27  ;;  %v1694_v27 = vmov 0.0  }
  0x8d   : > { %1466 = vmatprep.mubr.msk.f32.mxu0 %vm1693_vm0, %v1694_v27  ;;  %1469 = vmatprep.subr.mxu1 %v1694_v27 }
  0x8e   : > { %1471 = vmatprep.mubr.msk.f32.mxu1 %vm1693_vm0, %v1694_v27  ;;  %vm972_vm0 = vcmask 31744  }
  0x8f   : > { %302 = vadd.xlane.f32.xlu1 %v301_v32  ;;  %v2101_v32 = vsub.s32 %v2088_v19, %v2096_v22 }
  0x90   : > { %278 = vadd.xlane.f32.xlu0 %v277_v33 }
  0x93   : > { %344 = vadd.xlane.f32.xlu1 %v343_v38 }
  0x94   : > { %323 = vadd.xlane.f32.xlu0 %v322_v39 }
  0x97   : > { %392 = vmax.xlane.f32.xlu1 %v391_v40 }
  0x98   : > { %368 = vmax.xlane.f32.xlu0 %v367_v41 }
  0x9b   : > { %434 = vmax.xlane.f32.xlu1 %v433_v44 }
  0x9c   : > { %413 = vmax.xlane.f32.xlu0 %v412_v45 }
  0x9f   : > { %347 = vadd.xlane.f32.xlu1 %v346_v50 }
  0xa0   : > { %326 = vadd.xlane.f32.xlu0 %v325_v51 }
  0xa3   : > { %395 = vmax.xlane.f32.xlu1 %v394_v52 }
  0xa4   : > { %371 = vmax.xlane.f32.xlu0 %v370_v53 }
  0xa7   : > { %437 = vmax.xlane.f32.xlu1 %v436_v54 }
  0xa8   : > { %416 = vmax.xlane.f32.xlu0 %v415_v55 }
  0xab   : > { %374 = vmax.xlane.f32.xlu1 %v373_v60 }
  0xac   : > { %350 = vadd.xlane.f32.xlu0 %v349_v61  ;;  %v532_v61 = vadd.s32 4294967272, %v2088_v19 }
  0xae   : > { %v2123_v6 = vsub.s32 %v532_v61, %v2096_v22 }
  0xaf   : > { %419 = vmax.xlane.f32.xlu1 %v418_v62 }
  0xb0   : > { %398 = vmax.xlane.f32.xlu0 %v397_v63 }
  0xb3   : > { %422 = vmax.xlane.f32.xlu1 %v421_v0 }
  0xb4   : > { %440 = vmax.xlane.f32.xlu0 %v439_v1 }
  0xb7   : > { %446 = vmax.xlane.f32.xlu1 %v445_v2 }
  0xb8   : > { %443 = vmax.xlane.f32.xlu0 %v442_v3 }
  0xc8   : > { %v282_v25 = vpop.xlane.xlu1 %281 }
  0xc9   : > { %v258_v26 = vpop.xlane.xlu0 %257  ;;  %v456_v33 = vmul.f32 0.00390625, %v282_v25 }
  0xca   : > { %v448_v38 = vmul.f32 0.00390625, %v258_v26 }
  0xcb   : > { %v570_v45 = vrot.slane %v456_v33, %v2101_v32 }
  0xcc   : > { %v285_v39 = vpop.xlane.xlu1 %284  ;;  %v517_v50 = vrot.slane %v448_v38, %v2101_v32 }
  0xcd   : > { %v457_v40 = vmul.f32 0.00390625, %v285_v39  ;;  %v261_v41 = vpop.xlane.xlu0 %260 }
  0xce   : > { %v449_v44 = vmul.f32 0.00390625, %v261_v41 }
  0xcf   : > { %v574_v46 = vrot.slane %v457_v40, %v2104_v34  ;;  %v539_v40 = vadd.s32 4294967264, %v2088_v19 }
  0xd0   : > { %v522_v51 = vrot.slane %v449_v44, %v2104_v34  ;;  %v288_v52 = vpop.xlane.xlu1 %287 }
  0xd1   : > { %v575_v53 = vsel %vm523_vm1, %v574_v46, %v570_v45  ;;  %v458_v54 = vmul.f32 0.00390625, %v288_v52  ;;  %v264_v55 = vpop.xlane.xlu0 %263 }
  0xd2   : > { %v524_v56 = vsel %vm523_vm1, %v522_v51, %v517_v50  ;;  %v450_v57 = vmul.f32 0.00390625, %v264_v55 }
  0xd3   : > { %v579_v60 = vrot.slane %v458_v54, %v2110_v47 }
  0xd4   : > { %v529_v62 = vrot.slane %v450_v57, %v2110_v47  ;;  %v309_v63 = vpop.xlane.xlu1 %308 }
  0xd5   : > { %v580_v0 = vsel %vm530_vm2, %v579_v60, %v575_v53  ;;  %v465_v1 = vmul.f32 0.00390625, %v309_v63  ;;  %v306_v2 = vpop.xlane.xlu0 %305  ;;  %v2140_v53 = vsub.s32 %v539_v40, %v2096_v22 }
  0xd6   : > { %v531_v3 = vsel %vm530_vm2, %v529_v62, %v524_v56  ;;  %v464_v4 = vmul.f32 0.00390625, %v306_v2 }
  0xd7   : > { %v613_v5 = vrot.slane %v465_v1, %v2104_v34 }
  0xd8   : > { %v609_v7 = vrot.slane %v464_v4, %v2101_v32  ;;  %v291_v8 = vpop.xlane.xlu1 %290 }
  0xd9   : > { %v459_v9 = vmul.f32 0.00390625, %v291_v8  ;;  %v267_v10 = vpop.xlane.xlu0 %266 }
  0xda   : > { %v614_v11 = vsel %vm523_vm1, %v613_v5, %v609_v7  ;;  %v451_v16 = vmul.f32 0.00390625, %v267_v10 }
  0xdb   : > { %v584_v17 = vrot.slane %v459_v9, %v2123_v6 }
  0xdc   : > { %v536_v18 = vrot.slane %v451_v16, %v2123_v6  ;;  %v330_v20 = vpop.xlane.xlu1 %329 }
  0xdd   : > { %v585_v21 = vsel %vm537_vm3, %v584_v17, %v580_v0  ;;  %v312_v23 = vpop.xlane.xlu0 %311  ;;  %v472_v26 = vmul.f32 0.00390625, %v330_v20  ;;  %v546_v20 = vadd.s32 4294967256, %v2088_v19 }
  0xde   : > { %v538_v24 = vsel %vm537_vm3, %v536_v18, %v531_v3  ;;  %v466_v25 = vmul.f32 0.00390625, %v312_v23 }
  0xdf   : > { %v648_v41 = vrot.slane %v472_v26, %v2101_v32 }
  0xe0   : > { %v618_v27 = vrot.slane %v466_v25, %v2110_v47  ;;  %v354_v33 = vpop.xlane.xlu1 %353 }
  0xe1   : > { %v333_v35 = vpop.xlane.xlu0 %332  ;;  %v726_v50 = vrot.slane %v354_v33, %v2101_v32  ;;  %v2163_v33 = vsub.s32 %v546_v20, %v2096_v22 }
  0xe2   : > { %v619_v38 = vsel %vm530_vm2, %v618_v27, %v614_v11  ;;  %v473_v39 = vmul.f32 0.00390625, %v333_v35 }
  0xe4   : > { %v652_v44 = vrot.slane %v473_v39, %v2104_v34  ;;  %v378_v45 = vpop.xlane.xlu1 %377 }
  0xe5   : > { %v357_v46 = vpop.xlane.xlu0 %356  ;;  %v765_v60 = vrot.slane %v378_v45, %v2101_v32 }
  0xe6   : > { %v653_v51 = vsel %vm523_vm1, %v652_v44, %v648_v41  ;;  %v730_v52 = vrot.slane %v357_v46, %v2104_v34 }
  0xe8   : > { %v731_v54 = vsel %vm523_vm1, %v730_v52, %v726_v50  ;;  %v270_v55 = vpop.xlane.xlu1 %269 }
  0xe9   : > { %v452_v56 = vmul.f32 0.00390625, %v270_v55  ;;  %v381_v57 = vpop.xlane.xlu0 %380 }
  0xea   : > { %v769_v61 = vrot.slane %v381_v57, %v2104_v34 }
  0xeb   : > { %v543_v62 = vrot.slane %v452_v56, %v2140_v53 }
  0xec   : > { %v770_v63 = vsel %vm523_vm1, %v769_v61, %v765_v60  ;;  %v315_v0 = vpop.xlane.xlu1 %314 }
  0xed   : > { %v545_v1 = vsel %vm544_vm4, %v543_v62, %v538_v24  ;;  %v467_v2 = vmul.f32 0.00390625, %v315_v0  ;;  %v294_v3 = vpop.xlane.xlu0 %293 }
  0xee   : > { %v460_v4 = vmul.f32 0.00390625, %v294_v3 }
  0xef   : > { %v623_v5 = vrot.slane %v467_v2, %v2123_v6 }
  0xf0   : > { %v589_v7 = vrot.slane %v460_v4, %v2140_v53  ;;  %v360_v8 = vpop.xlane.xlu1 %359 }
  0xf1   : > { %v624_v9 = vsel %vm537_vm3, %v623_v5, %v619_v38  ;;  %v735_v10 = vrot.slane %v360_v8, %v2110_v47  ;;  %v336_v11 = vpop.xlane.xlu0 %335  ;;  %v553_v8 = vadd.s32 4294967248, %v2088_v19 }
  0xf2   : > { %v590_v16 = vsel %vm544_vm4, %v589_v7, %v585_v21  ;;  %v474_v17 = vmul.f32 0.00390625, %v336_v11  ;;  %v560_v11 = vadd.s32 4294967240, %v2088_v19 }
  0xf3   : > { %v2154_v18 = vsel %vm530_vm2, %v735_v10, %v731_v54 }
  0xf4   : > { %v657_v23 = vrot.slane %v474_v17, %v2110_v47  ;;  %v402_v24 = vpop.xlane.xlu1 %401 }
  0xf5   : > { %v384_v25 = vpop.xlane.xlu0 %383  ;;  %v804_v40 = vrot.slane %v402_v24, %v2101_v32 }
  0xf6   : > { %v2159_v26 = vsel %vm530_vm2, %v657_v23, %v653_v51  ;;  %v774_v27 = vrot.slane %v384_v25, %v2110_v47  ;;  %v2203_v25 = vsub.s32 %v560_v11, %v2096_v22 }
  0xf8   : > { %v2166_v21 = vsel %vm530_vm2, %v774_v27, %v770_v63  ;;  %v273_v35 = vpop.xlane.xlu1 %272 }
  0xf9   : > { %v453_v38 = vmul.f32 0.00390625, %v273_v35  ;;  %v405_v39 = vpop.xlane.xlu0 %404 }
  0xfa   : > { %v808_v41 = vrot.slane %v405_v39, %v2104_v34 }
  0xfb   : > { %v550_v44 = vrot.slane %v453_v38, %v2163_v33 }
  0xfc   : > { %v2172_v45 = vsel %vm523_vm1, %v808_v41, %v804_v40  ;;  %v318_v46 = vpop.xlane.xlu1 %317 }
  0xfd   : > { %v552_v50 = vsel %vm551_vm5, %v550_v44, %v545_v1  ;;  %v468_v51 = vmul.f32 0.00390625, %v318_v46  ;;  %v297_v52 = vpop.xlane.xlu0 %296 }
  0xfe   : > { %v461_v54 = vmul.f32 0.00390625, %v297_v52 }
  0xff   : > { %v628_v55 = vrot.slane %v468_v51, %v2140_v53 }
 0x100   : > { %v594_v56 = vrot.slane %v461_v54, %v2163_v33  ;;  %v2177_v57 = vpop.xlane.xlu1 %362 }
 0x101   : > { %v629_v60 = vsel %vm544_vm4, %v628_v55, %v624_v9  ;;  %v339_v61 = vpop.xlane.xlu0 %338 }
 0x102   : > { %v595_v62 = vsel %vm551_vm5, %v594_v56, %v590_v16  ;;  %v2196_v16 = vsub.s32 %v553_v8, %v2096_v22 }
 0x104   : > { %v2181_v63 = vpop.xlane.xlu1 %407 }
 0x105   : > { %v2183_v0 = vpop.xlane.xlu0 %386 }
 0x108   : > { %v2185_v2 = vpop.xlane.xlu1 %428 }
 0x109   : > { %v2187_v1 = vpop.xlane.xlu0 %425 }
 0x10c   : > { %v300_v3 = vpop.xlane.xlu1 %299 }
 0x10d   : > { %v276_v4 = vpop.xlane.xlu0 %275  ;;  %v462_v17 = vmul.f32 0.00390625, %v300_v3 }
 0x10e   : > { %v454_v23 = vmul.f32 0.00390625, %v276_v4 }
 0x10f   : > { %v599_v27 = vrot.slane %v462_v17, %v2196_v16 }
 0x110   : > { %v342_v5 = vpop.xlane.xlu1 %341  ;;  %v557_v38 = vrot.slane %v454_v23, %v2196_v16 }
 0x111   : > { %v321_v7 = vpop.xlane.xlu0 %320  ;;  %v600_v44 = vsel %vm558_vm6, %v599_v27, %v595_v62 }
 0x112   : > { %v559_v52 = vsel %vm558_vm6, %v557_v38, %v552_v50  ;;  %v469_v11 = vmul.f32 0.00390625, %v321_v7 }
 0x114   : > { %v2190_v10 = vpop.xlane.xlu1 %389  ;;  %v633_v27 = vrot.slane %v469_v11, %v2163_v33 }
 0x115   : > { %v2192_v9 = vpop.xlane.xlu0 %365 }
 0x118   : > { %v2198_v20 = vpop.xlane.xlu1 %431 }
 0x119   : > { %v2200_v24 = vpop.xlane.xlu0 %410 }
 0x11c   : > { %v303_v35 = vpop.xlane.xlu1 %302 }
 0x11d   : > { %v463_v39 = vmul.f32 0.00390625, %v303_v35  ;;  %v279_v19 = vpop.xlane.xlu0 %278 }
 0x11e   : > { %v455_v40 = vmul.f32 0.00390625, %v279_v19  ;;  %v475_v19 = vmul.f32 0.00390625, %v339_v61  ;;  %v813_v61 = vrot.slane %v2181_v63, %v2110_v47 }
 0x11f   : > { %v604_v41 = vrot.slane %v463_v39, %v2203_v25 }
 0x120   : > { %v564_v46 = vrot.slane %v455_v40, %v2203_v25  ;;  %v345_v51 = vpop.xlane.xlu1 %344  ;;  %v634_v40 = vsel %vm551_vm5, %v633_v27, %v629_v60  ;;  %v662_v11 = vrot.slane %v475_v19, %v2123_v6  ;;  %v779_v60 = vrot.slane %v2183_v0, %v2123_v6 }
 0x121   : > { %v605_v54 = vsel %vm565_vm7, %v604_v41, %v600_v44  ;;  %v324_v55 = vpop.xlane.xlu0 %323  ;;  %v814_v0 = vsel %vm530_vm2, %v813_v61, %v2172_v45  ;;  %v843_v45 = vrot.slane %v2187_v1, %v2101_v32 }
 0x122   : > { %v566_v56 = vsel %vm565_vm7, %v564_v46, %v559_v52  ;;  %v470_v23 = vmul.f32 0.00390625, %v324_v55  ;;  %v476_v52 = vmul.f32 0.00390625, %v342_v5  ;;  %v740_v55 = vrot.slane %v2177_v57, %v2123_v6 }
 0x123   : > { %v685_v3 = vsel %vm684_vm8, %v605_v54, %v566_v56  ;;  %v784_v57 = vrot.slane %v2190_v10, %v2140_v53  ;;  %v663_v63 = vsel %vm537_vm3, %v662_v11, %v2159_v26  ;;  %v745_v10 = vrot.slane %v2192_v9, %v2140_v53 }
 0x124   : > { %v393_v4 = vpop.xlane.xlu1 %392  ;;  %v638_v50 = vrot.slane %v470_v23, %v2196_v16  ;;  %v477_v23 = vmul.f32 0.00390625, %v345_v51  ;;  %v667_v5 = vrot.slane %v476_v52, %v2140_v53  ;;  %v780_v51 = vsel %vm537_vm3, %v779_v60, %v2166_v21 }
 0x125   : > { %v2213_v8 = vpop.xlane.xlu0 %368  ;;  %v789_v19 = vrot.slane %v393_v4, %v2163_v33 }
 0x126   : > { %v639_v7 = vsel %vm558_vm6, %v638_v50, %v634_v40  ;;  %v668_v21 = vsel %vm544_vm4, %v667_v5, %v663_v63 }
 0x128   : > { %v2215_v17 = vpop.xlane.xlu1 %434 }
 0x129   : > { %v2217_v62 = vpop.xlane.xlu0 %413 }
 0x12a   : > { %v823_v32 = vrot.slane %v2217_v62, %v2140_v53 }
 0x12c   : > { %v348_v35 = vpop.xlane.xlu1 %347 }
 0x12d   : > { %v327_v38 = vpop.xlane.xlu0 %326  ;;  %v478_v50 = vmul.f32 0.00390625, %v348_v35 }
 0x12e   : > { %v471_v39 = vmul.f32 0.00390625, %v327_v38 }
 0x12f   : > { %v677_v40 = vrot.slane %v478_v50, %v2196_v16 }
 0x130   : > { %v643_v41 = vrot.slane %v471_v39, %v2203_v25  ;;  %v396_v44 = vpop.xlane.xlu1 %395  ;;  %v741_v39 = vsel %vm537_vm3, %v740_v55, %v2154_v18  ;;  %v847_v18 = vrot.slane %v2185_v2, %v2104_v34  ;;  %v785_v34 = vsel %vm544_vm4, %v784_v57, %v780_v51 }
 0x131   : > { %v372_v46 = vpop.xlane.xlu0 %371  ;;  %v818_v2 = vrot.slane %v2200_v24, %v2123_v6  ;;  %v794_v9 = vrot.slane %v396_v44, %v2196_v16  ;;  %v746_v55 = vsel %vm544_vm4, %v745_v10, %v741_v39  ;;  %v790_v11 = vsel %vm551_vm5, %v789_v19, %v785_v34 }
 0x132   : > { %v644_v54 = vsel %vm565_vm7, %v643_v41, %v639_v7  ;;  %v750_v41 = vrot.slane %v2213_v8, %v2163_v33  ;;  %v755_v4 = vrot.slane %v372_v46, %v2196_v16  ;;  %v857_v10 = vrot.slane %v2215_v17, %v2123_v6 }
 0x133   : > { %v687_v56 = vsel %vm686_vm9, %v644_v54, %v685_v3  ;;  %v672_v3 = vrot.slane %v477_v23, %v2163_v33  ;;  %v819_v50 = vsel %vm537_vm3, %v818_v2, %v814_v0  ;;  %v795_v5 = vsel %vm558_vm6, %v794_v9, %v790_v11 }
 0x134   : > { %v2232_v27 = vpop.xlane.xlu1 %437  ;;  %v751_v46 = vsel %vm551_vm5, %v750_v41, %v746_v55  ;;  %v824_v63 = vsel %vm544_vm4, %v823_v32, %v819_v50 }
 0x135   : > { %v417_v38 = vpop.xlane.xlu0 %416  ;;  %v673_v52 = vsel %vm551_vm5, %v672_v3, %v668_v21  ;;  %v756_v39 = vsel %vm558_vm6, %v755_v4, %v751_v46  ;;  %v1061_v46 = vsub.s32 0, %v2096_v22 }
 0x136   : > { %v678_v24 = vsel %vm558_vm6, %v677_v40, %v673_v52  ;;  %v828_v44 = vrot.slane %v417_v38, %v2163_v33  ;;  %v852_v38 = vrot.slane %v2198_v20, %v2110_v47  ;;  %v862_v47 = vrot.slane %v2232_v27, %v2140_v53 }
 0x138   : > { %v375_v35 = vpop.xlane.xlu1 %374  ;;  %v829_v0 = vsel %vm551_vm5, %v828_v44, %v824_v63 }
 0x139   : > { %v351_v26 = vpop.xlane.xlu0 %350  ;;  %v760_v1 = vrot.slane %v375_v35, %v2203_v25 }
 0x13a   : > { %v479_v7 = vmul.f32 0.00390625, %v351_v26  ;;  %v848_v26 = vsel %vm523_vm1, %v847_v18, %v843_v45 }
 0x13b   : > { %v761_v51 = vsel %vm565_vm7, %v760_v1, %v756_v39  ;;  %v853_v6 = vsel %vm530_vm2, %v852_v38, %v848_v26  ;;  %v1547_v26 = vld [vmem:[%s1828_s11 + $0x20] sm:$0xff] }
 0x13c   : > { %v682_v54 = vrot.slane %v479_v7, %v2203_v25  ;;  %v420_v8 = vpop.xlane.xlu1 %419  ;;  %v858_v34 = vsel %vm537_vm3, %v857_v10, %v853_v6 }
 0x13d   : > { %v399_v61 = vpop.xlane.xlu0 %398  ;;  %v833_v62 = vrot.slane %v420_v8, %v2196_v16  ;;  %v863_v53 = vsel %vm544_vm4, %v862_v47, %v858_v34 }
 0x13e   : > { %v683_v60 = vsel %vm565_vm7, %v682_v54, %v678_v24  ;;  %v799_v23 = vrot.slane %v399_v61, %v2203_v25 }
 0x13f   : > { %v689_v57 = vsel %vm688_vm11, %v683_v60, %v687_v56  ;;  %v834_v20 = vsel %vm558_vm6, %v833_v62, %v829_v0  ;;  %v1545_v0 = vld [vmem:[%s1828_s11] sm:$0xff] }
 0x140   : > { %v800_v3 = vsel %vm565_vm7, %v799_v23, %v795_v5  ;;  %v423_v35 = vpop.xlane.xlu1 %422  ;;  %v1096_v23 = vsub.s32 1, %v2096_v22  ;;  %v1131_v5 = vsub.s32 2, %v2096_v22 }
 0x141   : > { %v880_v19 = vsel %vm879_vm10, %v800_v3, %v761_v51  ;;  %v838_v40 = vrot.slane %v423_v35, %v2203_v25  ;;  %v441_v56 = vpop.xlane.xlu0 %440  ;;  %v1543_v51 = vld [vmem:[%s1828_s11 + $0x10] sm:$0xff]  ;;  %v1544_v35 = vld [vmem:[%s1828_s11 + $0x18] sm:$0xff] }
 0x142   : > { %v867_v41 = vrot.slane %v441_v56, %v2163_v33 }
 0x143   : > { %v839_v21 = vsel %vm565_vm7, %v838_v40, %v834_v20  ;;  %v1546_v40 = vld [vmem:[%s1828_s11 + $0x8] sm:$0xff] }
 0x144   : > { %v882_v17 = vsel %vm881_vm12, %v839_v21, %v880_v19  ;;  %v447_v7 = vpop.xlane.xlu1 %446  ;;  %v868_v18 = vsel %vm551_vm5, %v867_v41, %v863_v53  ;;  %v1548_v41 = vld [vmem:[%s1828_s11 + $0x28] sm:$0xff] }
 0x145   : > { %v444_v2 = vpop.xlane.xlu0 %443  ;;  %v877_v9 = vrot.slane %v447_v7, %v2203_v25  ;;  %v971_v25 = vld [vmem:[%s2496_s2] sm:$0xf] }
 0x146   : > { %v872_v27 = vrot.slane %v444_v2, %v2196_v16  ;;  %1470 = vmatpush3.msk.msra.mxu1 %vm886_vm14, %v971_v25  ;;  %v1551_v25 = vld [vmem:[%s1828_s11 + $0x80] sm:$0xff] }
 0x148   : > { %v873_v45 = vsel %vm558_vm6, %v872_v27, %v868_v18  ;;  %v1550_v27 = vld [vmem:[%s1828_s11 + $0x38] sm:$0xff] }
 0x149   : > { %v878_v33 = vsel %vm565_vm7, %v877_v9, %v873_v45  ;;  %v1549_v9 = vld [vmem:[%s1828_s11 + $0x30] sm:$0xff] }
 0x14a   : > { %v884_v4 = vsel %vm883_vm13, %v878_v33, %v882_v17 }
 0x14b   : > { %v887_v52 = vsel %vm886_vm14, %v689_v57, %v884_v4  ;;  %v1166_v57 = vsub.s32 3, %v2096_v22 }
 0x14c   : > { %1467 = vmatmul.mubr.msk.f32.vlgmr.msra.gmra.mrb[0].mxu0 %vm896_vm15, %v887_v52 }
 0x21f   : > { %v966_v32 = vpop.f32.mrb[0].mxu0 }
 0x220   : > { %v970_v16 = vmax.f32 %v966_v32, 0.0  ;;  %v1468_v1 = vpop.f32.mrb[1].mxu0 }
 0x222   : > { %1472 = vmatmul.mubr.msk.f32.vlgmr.msra.gmra.mrb[0].mxu1 %vm972_vm0, %v970_v16 }
 0x2f5   : > { %v1045_v54 = vpop.f32.mrb[0].mxu1 }
 0x2f6   : > { %v1050_v8 = vrot.slane %v1045_v54, 4  ;;  %v1473_v55 = vpop.f32.mrb[1].mxu1 }
 0x2f7   : > { %v1554_v55 = vld [vmem:[%s1828_s11 + $0xa8] sm:$0xff] }
 0x2f8   : > { %v1052_v11 = vadd.f32 %v1050_v8, %v1045_v54  ;;  %v1553_v54 = vld [vmem:[%s1828_s11 + $0xa0] sm:$0xff] }
 0x2fa   : > { %v1428_v24 = vmul.f32 -1.442695, %v1052_v11 }
 0x2fc   : > { %1539 = vpow2.f32 %v1428_v24 }
 0x306   : > { %v1540_v44 = vpop.eup %1539 }
 0x307   : > { %v1056_v61 = vadd.f32 1.0, %v1540_v44 }
 0x309   : > { %1541 = vrcp.f32 %v1056_v61 }
 0x313   : > { %v1542_v60 = vpop.eup %1541 }
 0x314   : > { %v1062_v62 = vrot.slane %v1542_v60, %v1061_v46  ;;  %v1097_v50 = vrot.slane %v1542_v60, %v1096_v23  ;;  %v1132_v39 = vrot.slane %v1542_v60, %v1131_v5  ;;  %v1167_v38 = vrot.slane %v1542_v60, %v1166_v57  ;;  %v1557_v60 = vld [vmem:[%s1828_s11 + $0xc0] sm:$0xff]  ;;  %v1558_v23 = vld [vmem:[%s1828_s11 + $0xc8] sm:$0xff]  ;;  %v1559_v57 = vld [vmem:[%s1828_s11 + $0xb0] sm:$0xff] }
 0x316   : > { %1068 = vbcast.lane.b32.xlu1 %v1062_v62, 264  ;;  %1064 = vbcast.lane.b32.xlu0 %v1062_v62, 256 }
 0x31a   : > { %1072 = vbcast.lane.b32.xlu1 %v1062_v62, 272  ;;  %1080 = vbcast.lane.b32.xlu0 %v1062_v62, 288 }
 0x31e   : > { %1076 = vbcast.lane.b32.xlu1 %v1062_v62, 280  ;;  %1088 = vbcast.lane.b32.xlu0 %v1062_v62, 304 }
 0x322   : > { %1084 = vbcast.lane.b32.xlu1 %v1062_v62, 296  ;;  %1099 = vbcast.lane.b32.xlu0 %v1097_v50, 256 }
 0x326   : > { %1092 = vbcast.lane.b32.xlu1 %v1062_v62, 312  ;;  %1107 = vbcast.lane.b32.xlu0 %v1097_v50, 272 }
 0x32a   : > { %1103 = vbcast.lane.b32.xlu1 %v1097_v50, 264  ;;  %1115 = vbcast.lane.b32.xlu0 %v1097_v50, 288 }
 0x32e   : > { %1111 = vbcast.lane.b32.xlu1 %v1097_v50, 280  ;;  %1123 = vbcast.lane.b32.xlu0 %v1097_v50, 304 }
 0x332   : > { %1119 = vbcast.lane.b32.xlu1 %v1097_v50, 296  ;;  %1134 = vbcast.lane.b32.xlu0 %v1132_v39, 256 }
 0x336   : > { %1127 = vbcast.lane.b32.xlu1 %v1097_v50, 312  ;;  %1142 = vbcast.lane.b32.xlu0 %v1132_v39, 272 }
 0x33a   : > { %1138 = vbcast.lane.b32.xlu1 %v1132_v39, 264  ;;  %1150 = vbcast.lane.b32.xlu0 %v1132_v39, 288 }
 0x33e   : > { %1146 = vbcast.lane.b32.xlu1 %v1132_v39, 280  ;;  %1158 = vbcast.lane.b32.xlu0 %v1132_v39, 304 }
 0x342   : > { %1154 = vbcast.lane.b32.xlu1 %v1132_v39, 296  ;;  %1169 = vbcast.lane.b32.xlu0 %v1167_v38, 256 }
 0x346   : > { %1162 = vbcast.lane.b32.xlu1 %v1132_v39, 312  ;;  %1177 = vbcast.lane.b32.xlu0 %v1167_v38, 272 }
 0x34a   : > { %1173 = vbcast.lane.b32.xlu1 %v1167_v38, 264  ;;  %1185 = vbcast.lane.b32.xlu0 %v1167_v38, 288 }
 0x34e   : > { %1181 = vbcast.lane.b32.xlu1 %v1167_v38, 280  ;;  %1193 = vbcast.lane.b32.xlu0 %v1167_v38, 304 }
 0x352   : > { %1189 = vbcast.lane.b32.xlu1 %v1167_v38, 296 }
 0x356   : > { %1197 = vbcast.lane.b32.xlu1 %v1167_v38, 312 }
 0x388   : > { %v1069_v63 = vpop.permute.xlu1 %1068  ;;  %v1065_v22 = vpop.permute.xlu0 %1064 }
 0x389   : > { %v1201_v3 = vmul.f32 %v1543_v51, %v1069_v63  ;;  %v1202_v10 = vmul.f32 %v1544_v35, %v1069_v63  ;;  %v1199_v19 = vmul.f32 %v1545_v0, %v1065_v22  ;;  %v1200_v56 = vmul.f32 %v1546_v40, %v1065_v22  ;;  %v1560_v63 = vld [vmem:[%s1828_s11 + $0xb8] sm:$0xff]  ;;  %v1561_v0 = vld [vmem:[%s1828_s11 + $0xd0] sm:$0xff] }
 0x38a   : > { %v1562_v40 = vld [vmem:[%s1828_s11 + $0xd8] sm:$0xff] }
 0x38b   : > { %1265 = vst [vmem:[%s2317_s7 + $0x10] sm:$0xff] %v1201_v3  ;;  %1266 = vst [vmem:[%s2317_s7 + $0x18] sm:$0xff] %v1202_v10 }
 0x38c   : > { %1263 = vst [vmem:[%s2317_s7] sm:$0xff] %v1199_v19  ;;  %1264 = vst [vmem:[%s2317_s7 + $0x8] sm:$0xff] %v1200_v56  ;;  %v1073_v47 = vpop.permute.xlu1 %1072  ;;  %v1081_v20 = vpop.permute.xlu0 %1080 }
 0x38d   : > { %v1203_v21 = vmul.f32 %v1547_v26, %v1073_v47  ;;  %v1204_v6 = vmul.f32 %v1548_v41, %v1073_v47  ;;  %v1207_v17 = vmul.f32 %v1081_v20, %v1906_v42  ;;  %v1208_v7 = vmul.f32 %v1081_v20, %v1909_v43  ;;  %v1563_v47 = vld [vmem:[%s1828_s11 + $0x100] sm:$0xff] }
 0x38f   : > { %1267 = vst [vmem:[%s2317_s7 + $0x20] sm:$0xff] %v1203_v21  ;;  %1268 = vst [vmem:[%s2317_s7 + $0x28] sm:$0xff] %v1204_v6 }
 0x390   : > { %1271 = vst [vmem:[%s2317_s7 + $0x40] sm:$0xff] %v1207_v17  ;;  %1272 = vst [vmem:[%s2317_s7 + $0x48] sm:$0xff] %v1208_v7  ;;  %v1077_v34 = vpop.permute.xlu1 %1076  ;;  %v1089_v2 = vpop.permute.xlu0 %1088  ;;  %v1565_v17 = vld [vmem:[%s1828_s11 + $0x120] sm:$0xff] }
 0x391   : > { %v1205_v53 = vmul.f32 %v1549_v9, %v1077_v34  ;;  %v1206_v18 = vmul.f32 %v1550_v27, %v1077_v34  ;;  %v1211_v42 = vmul.f32 %v1089_v2, %v1991_v14  ;;  %v1212_v43 = vmul.f32 %v1089_v2, %v1994_v15  ;;  %v1552_v14 = vld [vmem:[%s1828_s11 + $0x88] sm:$0xff] }
 0x392   : > { %v1566_v34 = vld [vmem:[%s1828_s11 + $0x128] sm:$0xff] }
 0x393   : > { %1269 = vst [vmem:[%s2317_s7 + $0x30] sm:$0xff] %v1205_v53  ;;  %1270 = vst [vmem:[%s2317_s7 + $0x38] sm:$0xff] %v1206_v18 }
 0x394   : > { %1275 = vst [vmem:[%s2317_s7 + $0x60] sm:$0xff] %v1211_v42  ;;  %1276 = vst [vmem:[%s2317_s7 + $0x68] sm:$0xff] %v1212_v43  ;;  %v1085_v45 = vpop.permute.xlu1 %1084  ;;  %v1100_v33 = vpop.permute.xlu0 %1099  ;;  %v1569_v42 = vld [vmem:[%s1828_s11 + $0x140] sm:$0xff] }
 0x395   : > { %v1209_v4 = vmul.f32 %v1085_v45, %v1941_v58  ;;  %v1210_v52 = vmul.f32 %v1085_v45, %v1944_v59  ;;  %v1215_v32 = vmul.f32 %v1551_v25, %v1100_v33  ;;  %v1216_v15 = vmul.f32 %v1552_v14, %v1100_v33  ;;  %v1570_v45 = vld [vmem:[%s1828_s11 + $0x148] sm:$0xff]  ;;  %v1571_v25 = vld [vmem:[%s1828_s11 + $0x130] sm:$0xff]  ;;  %v1572_v14 = vld [vmem:[%s1828_s11 + $0x138] sm:$0xff] }
 0x397   : > { %1273 = vst [vmem:[%s2317_s7 + $0x50] sm:$0xff] %v1209_v4  ;;  %1274 = vst [vmem:[%s2317_s7 + $0x58] sm:$0xff] %v1210_v52 }
 0x398   : > { %1279 = vst [vmem:[%s2317_s7 + $0x80] sm:$0xff] %v1215_v32  ;;  %1280 = vst [vmem:[%s2317_s7 + $0x88] sm:$0xff] %v1216_v15  ;;  %v1093_v16 = vpop.permute.xlu1 %1092  ;;  %v1108_v1 = vpop.permute.xlu0 %1107 }
 0x399   : > { %v1213_v58 = vmul.f32 %v1093_v16, %v2019_v30  ;;  %v1214_v59 = vmul.f32 %v1093_v16, %v2022_v31  ;;  %v1219_v8 = vmul.f32 %v1553_v54, %v1108_v1  ;;  %v1220_v11 = vmul.f32 %v1554_v55, %v1108_v1  ;;  %v1555_v30 = vld [vmem:[%s1828_s11 + $0x90] sm:$0xff]  ;;  %v1556_v31 = vld [vmem:[%s1828_s11 + $0x98] sm:$0xff] }
 0x39a   : > { %v1573_v54 = vld [vmem:[%s1828_s11 + $0x150] sm:$0xff]  ;;  %v1574_v55 = vld [vmem:[%s1828_s11 + $0x158] sm:$0xff] }
 0x39b   : > { %1277 = vst [vmem:[%s2317_s7 + $0x70] sm:$0xff] %v1213_v58  ;;  %1278 = vst [vmem:[%s2317_s7 + $0x78] sm:$0xff] %v1214_v59 }
 0x39c   : > { %1283 = vst [vmem:[%s2317_s7 + $0xa0] sm:$0xff] %v1219_v8  ;;  %1284 = vst [vmem:[%s2317_s7 + $0xa8] sm:$0xff] %v1220_v11  ;;  %v1104_v24 = vpop.permute.xlu1 %1103  ;;  %v1116_v44 = vpop.permute.xlu0 %1115 }
 0x39d   : > { %v1217_v61 = vmul.f32 %v1555_v30, %v1104_v24  ;;  %v1218_v46 = vmul.f32 %v1556_v31, %v1104_v24  ;;  %v1223_v62 = vmul.f32 %v1557_v60, %v1116_v44  ;;  %v1224_v50 = vmul.f32 %v1558_v23, %v1116_v44  ;;  %v1575_v24 = vld [vmem:[%s1828_s11 + $0x180] sm:$0xff]  ;;  %v1578_v23 = vld [vmem:[%s1828_s11 + $0x1a8] sm:$0xff] }
 0x39e   : > { %v1577_v60 = vld [vmem:[%s1828_s11 + $0x1a0] sm:$0xff] }
 0x39f   : > { %1281 = vst [vmem:[%s2317_s7 + $0x90] sm:$0xff] %v1217_v61  ;;  %1282 = vst [vmem:[%s2317_s7 + $0x98] sm:$0xff] %v1218_v46 }
 0x3a0   : > { %1287 = vst [vmem:[%s2317_s7 + $0xc0] sm:$0xff] %v1223_v62  ;;  %1288 = vst [vmem:[%s2317_s7 + $0xc8] sm:$0xff] %v1224_v50  ;;  %v1112_v5 = vpop.permute.xlu1 %1111  ;;  %v1124_v39 = vpop.permute.xlu0 %1123 }
 0x3a1   : > { %v1221_v38 = vmul.f32 %v1559_v57, %v1112_v5  ;;  %v1222_v22 = vmul.f32 %v1560_v63, %v1112_v5  ;;  %v1227_v51 = vmul.f32 %v1124_v39, %v1985_v12  ;;  %v1228_v3 = vmul.f32 %v1124_v39, %v1988_v13  ;;  %v1564_v13 = vld [vmem:[%s1828_s11 + $0x108] sm:$0xff]  ;;  %v1581_v63 = vld [vmem:[%s1828_s11 + $0x1c0] sm:$0xff] }
 0x3a3   : > { %1285 = vst [vmem:[%s2317_s7 + $0xb0] sm:$0xff] %v1221_v38  ;;  %1286 = vst [vmem:[%s2317_s7 + $0xb8] sm:$0xff] %v1222_v22 }
 0x3a4   : > { %1291 = vst [vmem:[%s2317_s7 + $0xe0] sm:$0xff] %v1227_v51  ;;  %1292 = vst [vmem:[%s2317_s7 + $0xe8] sm:$0xff] %v1228_v3  ;;  %v1120_v35 = vpop.permute.xlu1 %1119  ;;  %v1135_v10 = vpop.permute.xlu0 %1134  ;;  %v1582_v51 = vld [vmem:[%s1828_s11 + $0x1c8] sm:$0xff] }
 0x3a5   : > { %v1225_v19 = vmul.f32 %v1561_v0, %v1120_v35  ;;  %v1226_v56 = vmul.f32 %v1562_v40, %v1120_v35  ;;  %v1231_v12 = vmul.f32 %v1563_v47, %v1135_v10  ;;  %v1232_v20 = vmul.f32 %v1564_v13, %v1135_v10  ;;  %v1583_v0 = vld [vmem:[%s1828_s11 + $0x1b0] sm:$0xff]  ;;  %v1584_v40 = vld [vmem:[%s1828_s11 + $0x1b8] sm:$0xff]  ;;  %v1585_v47 = vld [vmem:[%s1828_s11 + $0x1e0] sm:$0xff] }
 0x3a6   : > { %v1586_v13 = vld [vmem:[%s1828_s11 + $0x1e8] sm:$0xff] }
 0x3a7   : > { %1289 = vst [vmem:[%s2317_s7 + $0xd0] sm:$0xff] %v1225_v19  ;;  %1290 = vst [vmem:[%s2317_s7 + $0xd8] sm:$0xff] %v1226_v56 }
 0x3a8   : > { %1295 = vst [vmem:[%s2317_s7 + $0x100] sm:$0xff] %v1231_v12  ;;  %1296 = vst [vmem:[%s2317_s7 + $0x108] sm:$0xff] %v1232_v20  ;;  %v1128_v26 = vpop.permute.xlu1 %1127  ;;  %v1143_v21 = vpop.permute.xlu0 %1142 }
 0x3a9   : > { %v1229_v41 = vmul.f32 %v1128_v26, %v2013_v28  ;;  %v1230_v6 = vmul.f32 %v1128_v26, %v2016_v29  ;;  %v1235_v7 = vmul.f32 %v1565_v17, %v1143_v21  ;;  %v1236_v2 = vmul.f32 %v1566_v34, %v1143_v21  ;;  %v1567_v28 = vld [vmem:[%s1828_s11 + $0x110] sm:$0xff]  ;;  %v1568_v29 = vld [vmem:[%s1828_s11 + $0x118] sm:$0xff] }
 0x3aa   : > { %v1587_v21 = vld [vmem:[%s1828_s11 + $0x1d0] sm:$0xff] }
 0x3ab   : > { %1293 = vst [vmem:[%s2317_s7 + $0xf0] sm:$0xff] %v1229_v41  ;;  %1294 = vst [vmem:[%s2317_s7 + $0xf8] sm:$0xff] %v1230_v6  ;;  %v1588_v6 = vld [vmem:[%s1828_s11 + $0x1d8] sm:$0xff]  ;;  %v1589_v34 = vld [vmem:[%s1828_s11 + $0x1f0] sm:$0xff] }
 0x3ac   : > { %1299 = vst [vmem:[%s2317_s7 + $0x120] sm:$0xff] %v1235_v7  ;;  %1300 = vst [vmem:[%s2317_s7 + $0x128] sm:$0xff] %v1236_v2  ;;  %v1139_v9 = vpop.permute.xlu1 %1138  ;;  %v1151_v53 = vpop.permute.xlu0 %1150 }
 0x3ad   : > { %v1233_v27 = vmul.f32 %v1567_v28, %v1139_v9  ;;  %v1234_v18 = vmul.f32 %v1568_v29, %v1139_v9  ;;  %v1239_v43 = vmul.f32 %v1569_v42, %v1151_v53  ;;  %v1240_v33 = vmul.f32 %v1570_v45, %v1151_v53  ;;  %v1590_v9 = vld [vmem:[%s1828_s11 + $0x1f8] sm:$0xff] }
 0x3af   : > { %1297 = vst [vmem:[%s2317_s7 + $0x110] sm:$0xff] %v1233_v27  ;;  %1298 = vst [vmem:[%s2317_s7 + $0x118] sm:$0xff] %v1234_v18 }
 0x3b0   : > { %1303 = vst [vmem:[%s2317_s7 + $0x140] sm:$0xff] %v1239_v43  ;;  %1304 = vst [vmem:[%s2317_s7 + $0x148] sm:$0xff] %v1240_v33  ;;  %v1147_v4 = vpop.permute.xlu1 %1146  ;;  %v1159_v52 = vpop.permute.xlu0 %1158 }
 0x3b1   : > { %v1237_v32 = vmul.f32 %v1571_v25, %v1147_v4  ;;  %v1238_v15 = vmul.f32 %v1572_v14, %v1147_v4  ;;  %v1243_v16 = vmul.f32 %v1159_v52, %v2031_v36  ;;  %v1244_v1 = vmul.f32 %v1159_v52, %v2034_v37  ;;  %v1576_v37 = vld [vmem:[%s1828_s11 + $0x188] sm:$0xff] }
 0x3b3   : > { %1301 = vst [vmem:[%s2317_s7 + $0x130] sm:$0xff] %v1237_v32  ;;  %1302 = vst [vmem:[%s2317_s7 + $0x138] sm:$0xff] %v1238_v15 }
 0x3b4   : > { %1307 = vst [vmem:[%s2317_s7 + $0x160] sm:$0xff] %v1243_v16  ;;  %1308 = vst [vmem:[%s2317_s7 + $0x168] sm:$0xff] %v1244_v1  ;;  %v1155_v58 = vpop.permute.xlu1 %1154  ;;  %v1170_v59 = vpop.permute.xlu0 %1169 }
 0x3b5   : > { %v1241_v8 = vmul.f32 %v1573_v54, %v1155_v58  ;;  %v1242_v11 = vmul.f32 %v1574_v55, %v1155_v58  ;;  %v1247_v36 = vmul.f32 %v1575_v24, %v1170_v59  ;;  %v1248_v44 = vmul.f32 %v1576_v37, %v1170_v59 }
 0x3b7   : > { %1305 = vst [vmem:[%s2317_s7 + $0x150] sm:$0xff] %v1241_v8  ;;  %1306 = vst [vmem:[%s2317_s7 + $0x158] sm:$0xff] %v1242_v11 }
 0x3b8   : > { %1311 = vst [vmem:[%s2317_s7 + $0x180] sm:$0xff] %v1247_v36  ;;  %1312 = vst [vmem:[%s2317_s7 + $0x188] sm:$0xff] %v1248_v44  ;;  %v1163_v30 = vpop.permute.xlu1 %1162  ;;  %v1178_v61 = vpop.permute.xlu0 %1177 }
 0x3b9   : > { %v1245_v31 = vmul.f32 %v1163_v30, %v2049_v48  ;;  %v1246_v46 = vmul.f32 %v1163_v30, %v2052_v49  ;;  %v1251_v62 = vmul.f32 %v1577_v60, %v1178_v61  ;;  %v1252_v50 = vmul.f32 %v1578_v23, %v1178_v61  ;;  %v1579_v48 = vld [vmem:[%s1828_s11 + $0x190] sm:$0xff]  ;;  %v1580_v49 = vld [vmem:[%s1828_s11 + $0x198] sm:$0xff] }
 0x3bb   : > { %1309 = vst [vmem:[%s2317_s7 + $0x170] sm:$0xff] %v1245_v31  ;;  %1310 = vst [vmem:[%s2317_s7 + $0x178] sm:$0xff] %v1246_v46 }
 0x3bc   : > { %1315 = vst [vmem:[%s2317_s7 + $0x1a0] sm:$0xff] %v1251_v62  ;;  %1316 = vst [vmem:[%s2317_s7 + $0x1a8] sm:$0xff] %v1252_v50  ;;  %v1174_v5 = vpop.permute.xlu1 %1173  ;;  %v1186_v39 = vpop.permute.xlu0 %1185 }
 0x3bd   : > { %v1249_v57 = vmul.f32 %v1579_v48, %v1174_v5  ;;  %v1250_v38 = vmul.f32 %v1580_v49, %v1174_v5  ;;  %v1255_v22 = vmul.f32 %v1581_v63, %v1186_v39  ;;  %v1256_v3 = vmul.f32 %v1582_v51, %v1186_v39 }
 0x3bf   : > { %1313 = vst [vmem:[%s2317_s7 + $0x190] sm:$0xff] %v1249_v57  ;;  %1314 = vst [vmem:[%s2317_s7 + $0x198] sm:$0xff] %v1250_v38 }
 0x3c0   : > { %1319 = vst [vmem:[%s2317_s7 + $0x1c0] sm:$0xff] %v1255_v22  ;;  %1320 = vst [vmem:[%s2317_s7 + $0x1c8] sm:$0xff] %v1256_v3  ;;  %v1182_v35 = vpop.permute.xlu1 %1181  ;;  %v1194_v10 = vpop.permute.xlu0 %1193 }
 0x3c1   : > { %v1253_v19 = vmul.f32 %v1583_v0, %v1182_v35  ;;  %v1254_v56 = vmul.f32 %v1584_v40, %v1182_v35  ;;  %v1259_v12 = vmul.f32 %v1585_v47, %v1194_v10  ;;  %v1260_v20 = vmul.f32 %v1586_v13, %v1194_v10 }
 0x3c3   : > { %1317 = vst [vmem:[%s2317_s7 + $0x1b0] sm:$0xff] %v1253_v19  ;;  %1318 = vst [vmem:[%s2317_s7 + $0x1b8] sm:$0xff] %v1254_v56 }
 0x3c4   : > { %1323 = vst [vmem:[%s2317_s7 + $0x1e0] sm:$0xff] %v1259_v12  ;;  %1324 = vst [vmem:[%s2317_s7 + $0x1e8] sm:$0xff] %v1260_v20  ;;  %v1190_v26 = vpop.permute.xlu1 %1189 }
 0x3c5   : > { %v1257_v41 = vmul.f32 %v1587_v21, %v1190_v26  ;;  %v1258_v17 = vmul.f32 %v1588_v6, %v1190_v26 }
 0x3c7   : > { %1321 = vst [vmem:[%s2317_s7 + $0x1d0] sm:$0xff] %v1257_v41  ;;  %1322 = vst [vmem:[%s2317_s7 + $0x1d8] sm:$0xff] %v1258_v17 }
 0x3c8   : > { %v1198_v7 = vpop.permute.xlu1 %1197 }
 0x3c9   : > { %v1261_v2 = vmul.f32 %v1589_v34, %v1198_v7  ;;  %v1262_v53 = vmul.f32 %v1590_v9, %v1198_v7 }
 0x3cb   : > { %1325 = vst [vmem:[%s2317_s7 + $0x1f0] sm:$0xff] %v1261_v2  ;;  %1326 = vst [vmem:[%s2317_s7 + $0x1f8] sm:$0xff] %v1262_v53 }
 0x3cc   : > { %1634 = shalt.err (!%p1631_p2)
}
 0x3cd   : > { %s1635_s11 = scalar_lea.hbm %s2444_s20, 8192  ;;  %s1639_s10 = scalar_lea.hbm %s2497_s3, 16384 }
 0x3ce   : > { %p1636_p4 = scmp.ne.s32.totalorder %s2444_s20, %s1635_s11  ;;  %p1640_p9 = scmp.lt.u32.totalorder %s2444_s20, %s2497_s3 }
 0x3cf   : > { %p1641_p1 = scmp.lt.u32.totalorder %s1639_s10, %s1635_s11  ;;  %p1643_p6 = scmp.lt.u32.totalorder %s1635_s11, %s2444_s20 }
 0x3d0   : > { %p1637_p5 = pnand %p1636_p4, %p2504_p11 }
 0x3d1   : > { %p1642_p3 = por %p1641_p1, %p1640_p9 }
 0x3d2   : > { %p1638_p7 = pneg %p1637_p5 }
 0x3d3   : > { %p1644_p12 = por %p1643_p6, %p1642_p3 }
 0x3d5   : > { %p1645_p13 = pnand %p1644_p12, %p1638_p7 }
 0x3d7   : > { %1648 = shalt.err (!%p1645_p13)
}
 0x3d8   : > { %s1696_s6 = smov 256   ;;  %s1697_s7 = smov 16  }
 0x3d9   : > { %1488 = dma.vmem_to_hbm [thread:$0]  (%p2504_p11), %s2446_s8, 8192, %s2444_s20, %s1328_s16, %s1696_s6, %s1696_s6, %s1697_s7  }
 0x3da PF: > { %s1357_s9 = sand.u32 1, %s1675_s12   ;;  %p2505_p8 = scmp.ne.s32.totalorder %s2502_s25, 0 }
 0x3db   : > { %p2506_p10 = scmp.ge.s32.totalorder %s1687_s15, 2  ;;  %s1358_s17 = scalar_lea.sflag [#allocation4], %s1357_s9 }
 0x3dd   : > { %p1495_p0 = pnand %p2506_p10, %p2505_p8 }
 0x3df   : > { %1670 = dma.done.wait (!%p1495_p0), %s1358_s17, 8192  }
 0x3e0   : > { %1672 = vsyncadd (!%p1495_p0), %s1358_s17, 4294959104  ;;  %p16_p2 = scmp.ge.s32.totalorder %s1743_s18, 4   ;;  %s2507_s12 = smov %s1679_s13 }
 0x3e1   : > { %s2508_s13 = smov %s1683_s14  ;;  %s2509_s14 = smov %s1755_s21 }
 0x3e2   : > { %s2510_s15 = smov %s1743_s18  ;;  %18 = sbr.rel (!%p16_p2) target bundleno = 5 (0x5), region = 77 }
 0x3e9   :  { %1363 = vsyncpa [#allocation3], 1 }
 0x3ea   :  { %1365 = vsyncpa [#allocation3 + $0x1], 1 }
 0x3eb   :  { %1366 = vsyncpa [#allocation4], 1 }
 0x3ec   :  { %1368 = vsyncpa [#allocation4 + $0x1], 1 }

</bundles_post_ra>
